<compile_context>
chip_gen: v6e
topology: v6e:2x2x1
jax: 0.10.0
libtpu: 0.0.40
codegen_flags: <defaults>
</compile_context>

<pallas_src>
import jax
import jax.numpy as jnp
from jax.experimental import pallas as pl
from jax.experimental.pallas import tpu as pltpu

LANE = 128                 # vreg lane width
MAX_ROWS_PER_TILE = 4096   # 4096x128 f32 = 2 MiB/block; 4x live (dbl-buffered
                           # in+out) = 8 MiB VMEM -> fits every generation's
                           # default scoped-VMEM limit (incl. v7x / v5e).
PALLAS_MIN_N = 8192        # below this, pallas_call fixed overhead dominates


def _linear_kernel(x_ref, w_ref, b_ref, o_ref):
    # x_ref: (tile_rows, 128) VMEM;  w_ref / b_ref: (1,) SMEM;  o_ref like x_ref.
    # Pure VPU scalar FMA, full-width unmasked stores.
    o_ref[...] = x_ref[...] * w_ref[0] + b_ref[0]


def _round_up(a, m):
    return ((a + m - 1) // m) * m


def linear_regression_forward(x, w, b, *, force_pallas=False):
    """Linear(1, 1) forward.  x: (N, 1) f32, w: (1, 1), b: (1,) -> (N, 1)."""
    n, in_f = x.shape
    out_f = w.shape[0]
    assert in_f == 1 and out_f == 1, "LinearRegression is Linear(1, 1)"

    w_s = w.reshape(1).astype(x.dtype)   # scalar weight -> SMEM
    b_s = b.reshape(1).astype(x.dtype)   # scalar bias   -> SMEM

    # Tiny-N fast path: let XLA fuse a plain FMA (strictly faster than the
    # custom-call + repack overhead for small inputs).
    if n < PALLAS_MIN_N and not force_pallas:
        return x * w_s[0] + b_s[0]

    # --- lane-dense view: (N, 1) -> (rows, 128) ----------------------------
    rows = pl.cdiv(n, LANE)
    n_pad = rows * LANE
    x_flat = x.reshape(-1)
    if n_pad != n:
        # Pad only to the 128-lane boundary (<= 127 extra elements).
        x_flat = jnp.pad(x_flat, (0, n_pad - n))
    x2d = x_flat.reshape(rows, LANE)     # free bitcast-reshape when unpadded

    # --- row tiling ---------------------------------------------------------
    if rows < 16:
        # Single block equal to the full array dims (exempt from the (8,128)
        # divisibility rule).
        tile_rows = rows
    else:
        # At least 2 blocks so both v7x TensorCores split the work; tile_rows
        # is a multiple of 8 sublanes, capped at 2 MiB per block.  The last
        # block may be partial (no rounding of rows up to a tile multiple).
        tile_rows = min(MAX_ROWS_PER_TILE, _round_up(pl.cdiv(rows, 2), 8))
    grid = (pl.cdiv(rows, tile_rows),)

    out2d = pl.pallas_call(
        _linear_kernel,
        out_shape=jax.ShapeDtypeStruct((rows, LANE), x.dtype),
        grid=grid,
        in_specs=[
            pl.BlockSpec((tile_rows, LANE), lambda i: (i, 0)),
            pl.BlockSpec(memory_space=pltpu.MemorySpace.SMEM),
            pl.BlockSpec(memory_space=pltpu.MemorySpace.SMEM),
        ],
        out_specs=pl.BlockSpec((tile_rows, LANE), lambda i: (i, 0)),
        compiler_params=pltpu.CompilerParams(
            dimension_semantics=("parallel",),
        ),
    )(x2d, w_s, b_s)

    out_flat = out2d.reshape(-1)
    if n_pad != n:
        out_flat = out_flat[:n]
    return out_flat.reshape(n, out_f)


if __name__ == "__main__":
    key = jax.random.PRNGKey(0)
    kx, kw, kb, kx2 = jax.random.split(key, 4)

    # Inputs consistent with the module: x ~ (100, 1) (matches np.random.rand(100, 1)).
    x = jax.random.uniform(kx, (100, 1), dtype=jnp.float32)

    # Parameter init mimicking nn.Linear(1, 1): U(-1/sqrt(fan_in), 1/sqrt(fan_in)), fan_in=1.
    w = jax.random.uniform(kw, (1, 1), dtype=jnp.float32, minval=-1.0, maxval=1.0)
    b = jax.random.uniform(kb, (1,), dtype=jnp.float32, minval=-1.0, maxval=1.0)

    ref = x @ w.T + b

    # 1) Module-shape input routed through the Pallas kernel itself.
    out_pallas = jax.block_until_ready(
        linear_regression_forward(x, w, b, force_pallas=True))
    assert out_pallas.shape == (100, 1)
    assert jnp.allclose(out_pallas, ref, atol=1e-5), "pallas path mismatch"

    # 2) Default dispatch (tiny-N fused fast path) must agree.
    out_fast = jax.block_until_ready(linear_regression_forward(x, w, b))
    assert jnp.allclose(out_fast, ref, atol=1e-5), "fast path mismatch"

    # 3) Larger, non-lane-aligned N: exercises multi-block grid, partial last
    #    block, and the 128-lane-only padding path.
    n_big = 300_001
    x_big = jax.random.uniform(kx2, (n_big, 1), dtype=jnp.float32)
    out_big = jax.block_until_ready(linear_regression_forward(x_big, w, b))
    ref_big = x_big @ w.T + b
    assert out_big.shape == (n_big, 1)
    assert jnp.allclose(out_big, ref_big, atol=1e-5), "large-N mismatch"

    print("KERNEL_OK")
</pallas_src>

<mosaic_0001>
module attributes {stable_mosaic.version = 11 : i64} {
  func.func @_linear_kernel(%arg0: i32, %arg1: memref<1x128xf32, #tpu.memory_space<vmem>>, %arg2: memref<1xf32, #tpu.memory_space<smem>>, %arg3: memref<1xf32, #tpu.memory_space<smem>>, %arg4: memref<1x128xf32, #tpu.memory_space<vmem>>) attributes {dimension_semantics = [#tpu.dimension_semantics<parallel>], iteration_bounds = array<i64: 1>, scalar_prefetch = 0 : i64, scratch_operands = 0 : i64, tpu.core_type = #tpu.core_type<tc>, window_params = [{transform_indices = @transform_0, window_bounds = array<i64: 1, 128>}, {transform_indices = @transform_1, window_bounds = array<i64: 1>}, {transform_indices = @transform_2, window_bounds = array<i64: 1>}, {transform_indices = @transform_3, window_bounds = array<i64: 1, 128>}]} {
    %c0 = arith.constant 0 : index
    %c0_0 = arith.constant 0 : index
    %0 = vector.load %arg1[%c0, %c0_0] : memref<1x128xf32, #tpu.memory_space<vmem>>, vector<1x128xf32>
    %c0_1 = arith.constant 0 : index
    %1 = memref.load %arg2[%c0_1] : memref<1xf32, #tpu.memory_space<smem>>
    %2 = vector.broadcast %1 : f32 to vector<1x128xf32>
    %3 = arith.mulf %0, %2 : vector<1x128xf32>
    %c0_2 = arith.constant 0 : index
    %4 = memref.load %arg3[%c0_2] : memref<1xf32, #tpu.memory_space<smem>>
    %5 = vector.broadcast %4 : f32 to vector<1x128xf32>
    %6 = arith.addf %3, %5 : vector<1x128xf32>
    %c0_3 = arith.constant 0 : index
    %c0_4 = arith.constant 0 : index
    %7 = vector.load %arg4[%c0_3, %c0_4] : memref<1x128xf32, #tpu.memory_space<vmem>>, vector<1x128xf32>
    tpu.vector_store %arg4[%c0_3, %c0_4], %6 {strides = array<i32>} : memref<1x128xf32, #tpu.memory_space<vmem>>, vector<1x128xf32>,
    return
  }
  func.func @transform_0(%arg0: i32) -> (i32, i32) {
    %c0_i32 = arith.constant 0 : i32
    %c0_i32_0 = arith.constant 0 : i32
    return %arg0, %c0_i32 : i32, i32
  }
  func.func @transform_1(%arg0: i32) -> i32 {
    %c0_i32 = arith.constant 0 : i32
    %c0_i32_0 = arith.constant 0 : i32
    return %c0_i32 : i32
  }
  func.func @transform_2(%arg0: i32) -> i32 {
    %c0_i32 = arith.constant 0 : i32
    %c0_i32_0 = arith.constant 0 : i32
    return %c0_i32 : i32
  }
  func.func @transform_3(%arg0: i32) -> (i32, i32) {
    %c0_i32 = arith.constant 0 : i32
    %c0_i32_0 = arith.constant 0 : i32
    return %arg0, %c0_i32 : i32, i32
  }
}

</mosaic_0001>

<bundles_post_ra>
// kernel: tpu_custom_call.1
= control target key start
LH: loop header
LB: loop body
LE: loop exit
PB: predicated region body
PF: predicated region fallthrough
CT: control target
= control target key end

     0   :  { %s95_s0 = inlined_call_operand.vmem [shape: f32[1,128], index: 0, kind: input, shape index: {}]   ;;  %s96_s1 = inlined_call_operand.<no memory space> [shape: f32[1], index: 1, kind: input, shape index: {}]   ;;  %s97_s2 = inlined_call_operand.<no memory space> [shape: f32[1], index: 2, kind: input, shape index: {}]   ;;  %s98_s3 = inlined_call_operand.hbm [shape: f32[1,128], index: 3, kind: output, shape index: {}]  }
   0x1   :  { %v17_v0 = vld [vmem:[%s95_s0] sm:$0x1]  ;;  %v19_v1 = vstv %s96_s1  ;;  %v22_v2 = vstv %s97_s2 }
   0x2   :  { %10 = vsyncpa [#allocation5], 0  ;;  %v20_v3 = vmul.f32 %v19_v1, %v17_v0  ;;  %s62_s18 = smov [#allocation4]  }
   0x3   :  { %s31_s19 = sshll.u32 %s62_s18, 4  ;;  %s32_s19 = int_to_ptr.vmem [resolvable:$true] %s31_s19 }
   0x4   :  { %v23_v4 = vadd.f32 %v22_v2, %v20_v3  ;;  %s40_s20 = scalar_lea.vmem %s32_s19, 16  ;;  %s44_s21 = scalar_lea.vmem %s32_s19, 32 }
   0x5   :  { %p41_p0 = scmp.ne.s32.totalorder %s32_s19, %s40_s20  ;;  %p45_p1 = scmp.lt.s32.totalorder %s32_s19, %s32_s19 }
   0x6   :  { %24 = vst [vmem:[#allocation4] sm:$0x1] %v23_v4  ;;  %p46_p2 = scmp.lt.s32.totalorder %s44_s21, %s40_s20 }
   0x8   :  { %p47_p3 = por %p46_p2, %p45_p1 }
   0xa   :  { %p48_p4 = pnand %p47_p3, %p41_p0 }
   0xc   :  { %51 = shalt.err (!%p48_p4)
}
   0xd   :  { %34 = dma.vmem_to_hbm [thread:$0]  %s32_s19, 16, %s98_s3, [#allocation5]  }
   0xe   :  { %60 = dma.done.wait [#allocation5], 16  }
   0xf   :  { %61 = vsyncadd [#allocation5], 4294967280 }
  0x10   :  { %38 = vsyncpa [#allocation5], 1 }

</bundles_post_ra>
